<compile_context>
chip_gen: v5e
topology: v5e:2x2
jax: 0.10.0
libtpu: 0.0.40
codegen_flags: <defaults>
</compile_context>

<pallas_src>
import jax
import jax.numpy as jnp
from jax.experimental import pallas as pl
from jax.experimental.pallas import tpu as pltpu


def conv1x1_kernel(x_ref, w_ref, b_ref, o_ref):
    # x_ref: (bn, C, t_hw)   pixel tile (channels x pixels, pixels on lanes)
    # w_ref: (cls, C)        full weight, resident in VMEM across the grid
    # b_ref: (cls, 1)        bias column, broadcasts along the lane axis
    # o_ref: (bn, cls, t_hw) output tile (lane-dense)
    w = w_ref[...]
    b = b_ref[...]
    bn = x_ref.shape[0]
    # bn is a small static constant -> unrolled at trace time; each step is a
    # plain (cls, C) @ (C, t_hw) MXU matmul with f32 accumulation.
    for i in range(bn):
        acc = jnp.dot(w, x_ref[i], preferred_element_type=jnp.float32)
        o_ref[i] = (acc + b).astype(o_ref.dtype)


def _round_up(x, m):
    return ((x + m - 1) // m) * m


def _largest_divisor_le(n, cap):
    cap = max(1, min(n, cap))
    for d in range(cap, 0, -1):
        if n % d == 0:
            return d
    return 1


def _choose_tiles(N, C, cls, HW, itemsize,
                  per_step_bytes=8 << 20, lane_quantum=128):
    """Pick (bn, t_hw) so that one grid step moves ~per_step_bytes of HBM
    traffic (input + output), with t_hw lane-aligned (multiple of 128) or the
    full pixel extent, and bn a divisor of N."""
    bytes_per_lane = (C + cls) * itemsize
    max_lanes = max(lane_quantum, per_step_bytes // bytes_per_lane)

    if HW <= max_lanes:
        # Whole pixel axis fits in one tile; spend the remaining budget on
        # folding batch into the block.
        t_hw = HW  # full extent -> always a legal block dim
        bn_budget = max(1, per_step_bytes // (bytes_per_lane * t_hw))
        bn = _largest_divisor_le(N, bn_budget)
    else:
        # Tile the pixel axis with a 128-multiple; last block may be partial.
        t_hw = (max_lanes // lane_quantum) * lane_quantum
        bn = 1

    # Megacore (v7x has 2 TCs): make sure there are >= 2 grid steps along a
    # "parallel" axis whenever the problem is splittable.
    if (N // bn) * pl.cdiv(HW, t_hw) == 1:
        if HW >= 2 * lane_quantum:
            t_hw = _round_up(pl.cdiv(HW, 2), lane_quantum)
        elif bn >= 2:
            bn = _largest_divisor_le(N, N // 2)

    return bn, t_hw


def conv1d_classifier(x, weight, bias):
    """x: (N, C, H, W); weight: (cls, C, 1, 1); bias: (cls,)."""
    N, C, H, W = x.shape
    cls = weight.shape[0]
    HW = H * W

    # Free views only — no transposes, no extra HBM passes.
    x3 = x.reshape(N, C, HW)           # (N, C, HW)
    w2 = weight.reshape(cls, C)        # (cls, C)
    b2 = bias.reshape(cls, 1)          # (cls, 1)

    itemsize = jnp.dtype(x.dtype).itemsize
    bn, t_hw = _choose_tiles(N, C, cls, HW, itemsize)
    grid = (pl.cdiv(N, bn), pl.cdiv(HW, t_hw))

    # Double-buffered in/out tiles + (tiny) weight/bias, plus headroom.
    vmem_needed = 2 * (bn * (C + cls) * t_hw + cls * C + cls) * itemsize
    vmem_limit = int(max(32 << 20, vmem_needed + (2 << 20)))

    cost = pl.CostEstimate(
        flops=2 * N * HW * C * cls,
        transcendentals=0,
        bytes_accessed=(N * C * HW + N * cls * HW + cls * C + cls) * itemsize,
    )

    out3 = pl.pallas_call(
        conv1x1_kernel,
        out_shape=jax.ShapeDtypeStruct((N, cls, HW), x.dtype),
        grid_spec=pltpu.PrefetchScalarGridSpec(
            num_scalar_prefetch=0,
            grid=grid,
            in_specs=[
                # pixel tile: (bn, C, t_hw); C full-extent, t_hw lane-dense
                pl.BlockSpec((bn, C, t_hw), lambda n, j: (n, 0, j)),
                # full weight, resident across the whole grid
                pl.BlockSpec((cls, C), lambda n, j: (0, 0)),
                # full bias column, resident across the whole grid
                pl.BlockSpec((cls, 1), lambda n, j: (0, 0)),
            ],
            out_specs=pl.BlockSpec((bn, cls, t_hw), lambda n, j: (n, 0, j)),
        ),
        compiler_params=pltpu.CompilerParams(
            dimension_semantics=("parallel", "parallel"),
            vmem_limit_bytes=vmem_limit),
        cost_estimate=cost,
    )(x3, w2, b2)

    # Free reshape back to NCHW: (N, cls, H, W)
    return out3.reshape(N, cls, H, W)


if __name__ == "__main__":
    key = jax.random.PRNGKey(0)
    kx, kw, kb = jax.random.split(key, 3)

    N, in_ch, H, W = 2, 4, 16, 16
    cls = 8

    x = jax.random.normal(kx, (N, in_ch, H, W), dtype=jnp.float32)
    # Deterministic synthetic params (shapes match nn.Conv1d(in_ch, cls, (1,1))):
    # weight: (cls, in_ch, 1, 1), bias: (cls,)
    bound = 1.0 / jnp.sqrt(jnp.float32(in_ch))
    weight = jax.random.uniform(kw, (cls, in_ch, 1, 1), jnp.float32,
                                minval=-bound, maxval=bound)
    bias = jax.random.uniform(kb, (cls,), jnp.float32,
                              minval=-bound, maxval=bound)

    out = conv1d_classifier(x, weight, bias)
    out = jax.block_until_ready(out)

    # Pure-JAX reference of the same 1x1 conv semantics.
    ref = jnp.einsum("nchw,oc->nohw", x, weight.reshape(cls, in_ch)) \
          + bias.reshape(1, cls, 1, 1)
    assert out.shape == (N, cls, H, W)
    assert jnp.allclose(out, ref, atol=1e-5, rtol=1e-5)

    print("KERNEL_OK")
</pallas_src>

<mosaic_0001>
module attributes {stable_mosaic.version = 11 : i64} {
  func.func @conv1x1_kernel(%arg0: i32, %arg1: i32, %arg2: memref<2x4x128xf32, #tpu.memory_space<vmem>>, %arg3: memref<8x4xf32, #tpu.memory_space<vmem>>, %arg4: memref<8x1xf32, #tpu.memory_space<vmem>>, %arg5: memref<2x8x128xf32, #tpu.memory_space<vmem>>) attributes {dimension_semantics = [#tpu.dimension_semantics<parallel>, #tpu.dimension_semantics<parallel>], iteration_bounds = array<i64: 1, 2>, scalar_prefetch = 0 : i64, scratch_operands = 0 : i64, tpu.core_type = #tpu.core_type<tc>, window_params = [{transform_indices = @transform_0, window_bounds = array<i64: 2, 4, 128>}, {pipeline_mode = #tpu.pipeline_mode<synchronous>, transform_indices = @transform_1, window_bounds = array<i64: 8, 4>}, {pipeline_mode = #tpu.pipeline_mode<synchronous>, transform_indices = @transform_2, window_bounds = array<i64: 8, 1>}, {transform_indices = @transform_3, window_bounds = array<i64: 2, 8, 128>}]} {
    %c0 = arith.constant 0 : index
    %c0_0 = arith.constant 0 : index
    %0 = vector.load %arg3[%c0, %c0_0] : memref<8x4xf32, #tpu.memory_space<vmem>>, vector<8x4xf32>
    %c0_1 = arith.constant 0 : index
    %c0_2 = arith.constant 0 : index
    %1 = vector.load %arg4[%c0_1, %c0_2] : memref<8x1xf32, #tpu.memory_space<vmem>>, vector<8x1xf32>
    %c0_3 = arith.constant 0 : index
    %c0_4 = arith.constant 0 : index
    %c0_5 = arith.constant 0 : index
    %2 = vector.load %arg2[%c0_3, %c0_4, %c0_5] : memref<2x4x128xf32, #tpu.memory_space<vmem>>, vector<1x4x128xf32>
    %3 = vector.shape_cast %2 : vector<1x4x128xf32> to vector<4x128xf32>
    %cst = arith.constant dense<0.000000e+00> : vector<8x128xf32>
    %4 = tpu.matmul %0, %3, %cst {dimension_numbers = #tpu.dot_dimension_numbers<[1], [0], [0], [1], [0, 0, 1, 1], [], []>} : vector<8x4xf32>, vector<4x128xf32>, vector<8x128xf32> -> vector<8x128xf32>
    %5 = vector.broadcast %1 : vector<8x1xf32> to vector<8x128xf32>
    %6 = arith.addf %4, %5 : vector<8x128xf32>
    %c0_6 = arith.constant 0 : index
    %c0_7 = arith.constant 0 : index
    %c0_8 = arith.constant 0 : index
    %7 = vector.load %arg5[%c0_6, %c0_7, %c0_8] : memref<2x8x128xf32, #tpu.memory_space<vmem>>, vector<1x8x128xf32>
    %8 = vector.shape_cast %7 : vector<1x8x128xf32> to vector<8x128xf32>
    %9 = vector.shape_cast %6 : vector<8x128xf32> to vector<1x8x128xf32>
    tpu.vector_store %arg5[%c0_6, %c0_7, %c0_8], %9 {strides = array<i32>} : memref<2x8x128xf32, #tpu.memory_space<vmem>>, vector<1x8x128xf32>,
    %c1 = arith.constant 1 : index
    %c0_9 = arith.constant 0 : index
    %c0_10 = arith.constant 0 : index
    %10 = vector.load %arg2[%c1, %c0_9, %c0_10] : memref<2x4x128xf32, #tpu.memory_space<vmem>>, vector<1x4x128xf32>
    %11 = vector.shape_cast %10 : vector<1x4x128xf32> to vector<4x128xf32>
    %cst_11 = arith.constant dense<0.000000e+00> : vector<8x128xf32>
    %12 = tpu.matmul %0, %11, %cst_11 {dimension_numbers = #tpu.dot_dimension_numbers<[1], [0], [0], [1], [0, 0, 1, 1], [], []>} : vector<8x4xf32>, vector<4x128xf32>, vector<8x128xf32> -> vector<8x128xf32>
    %13 = vector.broadcast %1 : vector<8x1xf32> to vector<8x128xf32>
    %14 = arith.addf %12, %13 : vector<8x128xf32>
    %c1_12 = arith.constant 1 : index
    %c0_13 = arith.constant 0 : index
    %c0_14 = arith.constant 0 : index
    %15 = vector.load %arg5[%c1_12, %c0_13, %c0_14] : memref<2x8x128xf32, #tpu.memory_space<vmem>>, vector<1x8x128xf32>
    %16 = vector.shape_cast %15 : vector<1x8x128xf32> to vector<8x128xf32>
    %17 = vector.shape_cast %14 : vector<8x128xf32> to vector<1x8x128xf32>
    tpu.vector_store %arg5[%c1_12, %c0_13, %c0_14], %17 {strides = array<i32>} : memref<2x8x128xf32, #tpu.memory_space<vmem>>, vector<1x8x128xf32>,
    return
  }
  func.func @transform_0(%arg0: i32, %arg1: i32) -> (i32, i32, i32) {
    %c0_i32 = arith.constant 0 : i32
    %c0_i32_0 = arith.constant 0 : i32
    return %arg0, %c0_i32, %arg1 : i32, i32, i32
  }
  func.func @transform_1(%arg0: i32, %arg1: i32) -> (i32, i32) {
    %c0_i32 = arith.constant 0 : i32
    %c0_i32_0 = arith.constant 0 : i32
    %c0_i32_1 = arith.constant 0 : i32
    return %c0_i32, %c0_i32_0 : i32, i32
  }
  func.func @transform_2(%arg0: i32, %arg1: i32) -> (i32, i32) {
    %c0_i32 = arith.constant 0 : i32
    %c0_i32_0 = arith.constant 0 : i32
    %c0_i32_1 = arith.constant 0 : i32
    return %c0_i32, %c0_i32_0 : i32, i32
  }
  func.func @transform_3(%arg0: i32, %arg1: i32) -> (i32, i32, i32) {
    %c0_i32 = arith.constant 0 : i32
    %c0_i32_0 = arith.constant 0 : i32
    return %arg0, %c0_i32, %arg1 : i32, i32, i32
  }
}

</mosaic_0001>

<bundles_post_ra>
// kernel: tpu_custom_call.1
= control target key start
LH: loop header
LB: loop body
LE: loop exit
PB: predicated region body
PF: predicated region fallthrough
CT: control target
= control target key end

     0   :  { %8 = vsyncpa [#allocation4], 0  ;;  %s695_s0 = inlined_call_operand.vmem [shape: f32[2,4,256], index: 0, kind: input, shape index: {}]   ;;  %s696_s1 = inlined_call_operand.vmem [shape: f32[8,4], index: 1, kind: input, shape index: {}]   ;;  %s697_s2 = inlined_call_operand.vmem [shape: f32[8,1], index: 2, kind: input, shape index: {}]   ;;  %s698_s3 = inlined_call_operand.hbm [shape: f32[2,8,256], index: 3, kind: output, shape index: {}]  }
   0x1   :  { %10 = vsyncpa [#allocation4 + $0x1], 0  ;;  %s582_s12 = smov 0   ;;  %s584_s13 = smov 0  }
   0x2   :  { %s586_s14 = smov 0   ;;  %s588_s15 = smov 0  }
   0x3   :  { %s590_s16 = smov 0   ;;  %s592_s17 = smov 0  }
   0x4 LB: > { %s399_s18 = sadd.s32 4294967295, %s556_s17   ;;  %s400_s19 = sadd.s32 4294967294, %s556_s17   ;;  %s556_s17 = sphi %s592_s17, %s16_s17   ;;  %s552_s16 = sphi %s590_s16, %s705_s16   ;;  %s548_s15 = sphi %s588_s15, %s704_s15   ;;  %s544_s14 = sphi %s586_s14, %s703_s14   ;;  %s540_s13 = sphi %s584_s13, %s702_s13   ;;  %s536_s12 = sphi %s582_s12, %s701_s12  }
   0x5   : > { %s25_s20 = sadd.s32 1, %s552_s16  ;;  %s37_s21 = sadd.s32 1, %s544_s14 }
   0x6   : > { %p26_p0 = scmp.ge.s32.totalorder %s25_s20, 2  ;;  %p44_p1 = scmp.ne.s32.totalorder %s544_s14, %s540_s13 }
   0x7   : > { %p45_p2 = scmp.eq.s32.totalorder %s556_s17, 0  ;;  %p118_p3 = scmp.eq.s32.totalorder %s399_s18, 1 }
   0x8   : > { %s707_s20 = smov (%p26_p0, %s25_s20), 0  ;;  %p123_p6 = scmp.ne.s32.totalorder %s540_s13, %s536_s12 }
   0x9   : > { %p46_p4 = por %p45_p2, %p44_p1  ;;  %p621_p5 = por %p118_p3, %p44_p1 }
   0xa   : > { %s33_s23 = ssub.s32 %s552_s16, %s707_s20  ;;  %p124_p8 = scmp.eq.s32.totalorder %s400_s19, 1 }
   0xb   : > { %p35_p7 = scmp.eq.s32.totalorder %s33_s23, 0  ;;  %p402_p10 = scmp.ge.s32.totalorder %s556_s17, 2 }
   0xc   : > { %p632_p9 = por %p124_p8, %p123_p6 }
   0xd   : > { %s630_s24 = scalar_select %p35_p7, %s544_s14, %s37_s21  }
   0xe   : > { %146 = sbr.rel (%p402_p10) target bundleno = 25 (0x19), region = 24 }
  0x13   : > { %149 = sbr.rel (!%p46_p4) target bundleno = 25 (0x19), region = 28  ;;  %s151_s26 = sand.u32 (%p46_p4), 1, %s544_s14  }
  0x14   : > { %s404_s27 = sshll.u32 (%p46_p4), %s552_s16, 2  ;;  %s403_s28 = sshll.u32 (%p46_p4), %s151_s26, 3 }
  0x15   : > { %s158_s4 = scalar_lea.vmem (%p46_p4), %s695_s0, %s404_s27  ;;  %s153_s5 = scalar_lea.vmem (%p46_p4), [#allocation2], %s403_s28 }
  0x16   : > { %v175_v0 = vld [vmem:[%s158_s4] sm:$0xf] (%p46_p4)  ;;  %v177_v1 = vld [vmem:[%s158_s4 + $0x8] sm:$0xf] (%p46_p4) }
  0x17   : > { %176 = vst [vmem:[%s153_s5] sm:$0xf] (%p46_p4), %v175_v0 }
  0x18   : > { %178 = vst [vmem:[%s153_s5 + $0x4] sm:$0xf] %v177_v1 }
  0x19 PF: > { %p405_p11 = scmp.ge.s32.totalorder %s556_s17, 1  ;;  %p205_p12 = scmp.lt.s32.totalorder %s556_s17, 3 }
  0x1b   : > { %p206_p13 = pnand %p405_p11, %p205_p12 }
  0x1c   : > { %s647_s6 = sand.u32 (!%p206_p13), 1, %s540_s13   ;;  %s415_s21 = sshll.u32 (!%p206_p13), %s548_s15, 3 }
  0x1d   : > { %209 = sbr.rel (%p206_p13) target bundleno = 172 (0xac), region = 69  ;;  %s406_s9 = sshll.u32 (!%p206_p13), %s647_s6, 3 }
  0x1e   : > { %s214_s18 = scalar_lea.vmem (!%p206_p13), [#allocation2], %s406_s9  ;;  %s407_s19 = sshll.u32 (!%p206_p13), %s647_s6, 4 }
  0x1f   : > { %s315_s27 = scalar_lea.hbm (!%p206_p13), %s698_s3, %s415_s21  ;;  %s234_s28 = scalar_lea.vmem (!%p206_p13), [#allocation3], %s407_s19 }
  0x20   : > { %s316_s29 = sshll.u32 (!%p206_p13), %s234_s28, 4  ;;  %s318_s30 = sshll.u32 (!%p206_p13), %s315_s27, 4  ;;  %s317_s29 = int_to_ptr.vmem [resolvable:$true] %s316_s29  ;;  %s319_s30 = int_to_ptr.hbm [resolvable:$true] %s318_s30 }
  0x21   : > { %s302_s4 = scalar_lea.sflag (!%p206_p13), [#allocation4], %s647_s6  ;;  %s492_s5 = sshra.s32 (!%p206_p13), %s319_s30, 4  ;;  %s493_s5 = int_to_ptr.hbm [resolvable:$true] %s492_s5 }
  0x22   : > { %v238_v2 = vld [vmem:[%s697_s2] sm:$0xff]  ;;  %vm249_vm0 = vcmask 1043456   ;;  %v558_v3 = vmov 0   ;;  %vm245_vm1 = vcmask 31744   ;;  %s494_s15 = scalar_lea.hbm %s493_s5, 16  ;;  %s498_s9 = scalar_lea.hbm %s698_s3, 32 }
  0x23   : > { %477 = vset.pattern.permute.xlu0 %v558_v3  ;;  %v237_v4 = vld [vmem:[%s696_s1] sm:$0xff]  ;;  %p495_p0 = scmp.ne.s32.totalorder %s493_s5, %s494_s15  ;;  %p499_p3 = scmp.lt.s32.totalorder %s493_s5, %s698_s3 }
  0x24   : > { %242 = vperm.xlu0 %477, %v238_v2   ;;  %v239_v5 = vld [vmem:[%s214_s18] sm:$0xf]  ;;  %v410_v6 = vld [vmem:[%s214_s18 + $0x4] sm:$0xf]  ;;  %p500_p4 = scmp.lt.s32.totalorder %s498_s9, %s494_s15 }
  0x25   : > { %408 = vmatpush.msk.msra.mxu0 %vm249_vm0, %v239_v5  ;;  %411 = vmatpush.msk.msra.mxu1 %vm249_vm0, %v410_v6  ;;  %p496_p1 = pnand %p495_p0, %p621_p5 }
  0x26   : > { %409 = vmatmul.msk.f32.vlgmr.msra.gmra.mxu0 %vm245_vm1, %v237_v4  ;;  %412 = vmatmul.msk.f32.vlgmr.msra.gmra.mxu1 %vm245_vm1, %v237_v4  ;;  %p501_p6 = por %p500_p4, %p499_p3 }
  0x27   : > { %p497_p2 = pneg %p496_p1 }
  0x29   : > { %p502_p7 = pnand %p501_p6, %p497_p2 }
  0x96   : > { %v243_v7 = vpop.permute.xlu0 %242 }
  0xa3   : > { %v270_v8 = vpop.f32.mrf.mxu0  ;;  %v296_v9 = vpop.f32.mrf.mxu1 }
  0xa4   : > { %v271_v10 = vadd.f32 %v270_v8, %v243_v7  ;;  %v297_v11 = vadd.f32 %v296_v9, %v243_v7 }
  0xa6   : > { %273 = vst [vmem:[%s234_s28] sm:$0xff] %v271_v10 }
  0xa7   : > { %413 = vst [vmem:[%s234_s28 + $0x8] sm:$0xff] %v297_v11 }
  0xa8   : > { %505 = shalt.err (!%p502_p7)
}
  0xa9   : > { %s559_s6 = smov 128   ;;  %s560_s18 = smov 256  }
  0xaa   : > { %s561_s19 = smov 8  }
  0xab   : > { %418 = dma.vmem_to_hbm [thread:$0]  (%p621_p5), %s317_s29, 256, %s319_s30, %s302_s4, %s559_s6, %s560_s18, %s561_s19  }
  0xac PF: > { %s333_s21 = sand.u32 1, %s536_s12   ;;  %p421_p8 = pnand %p402_p10, %p632_p9 }
  0xad   : > { %s334_s23 = scalar_lea.sflag [#allocation4], %s333_s21 }
  0xae   : > { %p422_p11 = pneg %p421_p8 }
  0xb0   : > { %531 = dma.done.wait (%p422_p11), %s334_s23, 256  }
  0xb1   : > { %533 = vsyncadd (%p422_p11), %s334_s23, 4294967040  ;;  %s16_s17 = sadd.s32 1, %s556_s17   ;;  %s701_s12 = smov %s540_s13 }
  0xb2   : > { %p13_p12 = scmp.ge.s32.totalorder %s16_s17, 4   ;;  %s702_s13 = smov %s544_s14 }
  0xb3   : > { %s703_s14 = smov %s630_s24  ;;  %s704_s15 = smov %s552_s16 }
  0xb4   : > { %s705_s16 = smov %s707_s20  ;;  %15 = sbr.rel (!%p13_p12) target bundleno = 4 (0x4), region = 115 }
  0xb9   :  { %340 = vsyncpa [#allocation4], 1 }
  0xba   :  { %342 = vsyncpa [#allocation4 + $0x1], 1 }

</bundles_post_ra>
